<compile_context>
chip_gen: v7x
topology: tpu7x:2x2x1
jax: 0.10.0
libtpu: 0.0.40
codegen_flags: <defaults>
</compile_context>

<pallas_src>
import functools

import jax
import jax.numpy as jnp
from jax import lax
from jax.experimental import pallas as pl
from jax.experimental.pallas import tpu as pltpu
import numpy as np


def _decoder_kernel(x_ref, wih_t_ref, whh_t_ref, b_ref, wl_t_ref, bl_ref,
                    y_ref, hs_ref, *, T, B):
    """Whole LSTM recurrence + fused output head in one invocation.

    x_ref    : (B, T, D)   batch-first input (as produced by the caller)
    wih_t_ref: (D, 4H)     transposed input->gates weights (gate order i,f,g,o)
    whh_t_ref: (H, 4H)     transposed hidden->gates weights, bf16, lane-dense
    b_ref    : (1, 4H)     combined bias (b_ih + b_hh), gate order i,f,g,o
    wl_t_ref : (H, O)      transposed Linear_1 weight
    bl_ref   : (1, O)      Linear_1 bias
    y_ref    : (B, T*O)    output, tanh(Linear(h_t)) packed lane-dense per batch
    hs_ref   : (T*B, H)    VMEM scratch for the per-step hidden states
    """
    D = x_ref.shape[-1]
    H = whh_t_ref.shape[0]
    O = wl_t_ref.shape[1]

    # Small weights: load once, keep resident.
    wih_t = wih_t_ref[...]                  # (D, 4H) f32
    whh_t = whh_t_ref[...]                  # (H, 4H) bf16
    wl_t = wl_t_ref[...]                    # (H, O)  f32
    bl = bl_ref[...]                        # (1, O)

    # Hoisted input projection for all timesteps (one batched MXU matmul),
    # combined bias folded in.  Gate blocks along lanes: [ i | f | g | o ].
    xflat = x_ref[...].reshape(B * T, D)    # merge leading dims, last dim kept
    xw = jnp.dot(xflat, wih_t, preferred_element_type=jnp.float32) + b_ref[...]
    xw = xw.reshape(B, T, 4 * H)            # (B, T, 4H): per-step sublane select

    # Lane-mask constants for the fused activation (hoisted, full (B,4H) shape
    # so no per-iteration broadcast):  i/f/o lanes -> sigmoid via
    # 0.5*tanh(0.5x)+0.5 ;  g lanes -> tanh(x).
    lane = lax.broadcasted_iota(jnp.int32, (B, 4 * H), 1)
    is_g = (lane >= 2 * H) & (lane < 3 * H)
    scale = jnp.where(is_g, 1.0, 0.5).astype(jnp.float32)   # pre & post scale
    shift = jnp.where(is_g, 0.0, 0.5).astype(jnp.float32)

    h = jnp.zeros((B, H), jnp.float32)
    c = jnp.zeros((B, H), jnp.float32)
    # Fully unrolled recurrence (T small & static).  The only op on the serial
    # chain per step is one bf16 (B,H)x(H,4H) matmul + one EUP tanh pass + a
    # handful of VALU ops; the xw slices and hs stores are off-chain.
    for t in range(T):
        gates = xw[:, t, :] + jnp.dot(h.astype(jnp.bfloat16), whh_t,
                                      preferred_element_type=jnp.float32)
        act = jnp.tanh(gates * scale) * scale + shift   # [ sig | sig | tanh | sig ]
        gi = act[:, 0 * H:1 * H]
        gf = act[:, 1 * H:2 * H]
        gg = act[:, 2 * H:3 * H]
        go = act[:, 3 * H:4 * H]
        c = gf * c + gi * gg
        h = go * jnp.tanh(c)
        hs_ref[pl.ds(t * B, B), :] = h                  # off-chain scratch store

    # Batched output head after the recurrence: one matmul + one tanh, then the
    # time-major -> (B, T*O) rearrangement on the ~1 KiB value (sublane slices
    # + lane concat), finishing with a single unmasked 128-lane store.
    y = jnp.tanh(jnp.dot(hs_ref[...], wl_t,
                         preferred_element_type=jnp.float32) + bl)   # (T*B, O)
    y_ref[...] = jnp.concatenate(
        [y[t * B:(t + 1) * B, :] for t in range(T)], axis=1).astype(y_ref.dtype)


def prepare_decoder_params(params):
    """One-time, call-invariant layout prep (keep this OUT of the per-call path)."""
    w_ih, w_hh, b_ih, b_hh, w_lin, b_lin = (
        params["w_ih"], params["w_hh"], params["b_ih"], params["b_hh"],
        params["w_lin"], params["b_lin"],
    )
    H = w_hh.shape[1]
    O = w_lin.shape[0]
    return {
        "wih_t": jnp.transpose(w_ih, (1, 0)).astype(jnp.float32),       # (D, 4H)
        "whh_t": jnp.transpose(w_hh, (1, 0)).astype(jnp.bfloat16),      # (H, 4H)
        "b": (b_ih + b_hh).reshape(1, 4 * H).astype(jnp.float32),       # (1, 4H)
        "wl_t": jnp.transpose(w_lin, (1, 0)).astype(jnp.float32),       # (H, O)
        "bl": b_lin.reshape(1, O).astype(jnp.float32),                  # (1, O)
    }


@jax.jit
def decoder_forward(x, kparams):
    """x: (B, T, D) float32, kparams from prepare_decoder_params.
    Returns (B, T, out_dim) float32."""
    B, T, D = x.shape
    H = kparams["whh_t"].shape[0]
    O = kparams["wl_t"].shape[1]

    vmem = pl.BlockSpec(memory_space=pltpu.MemorySpace.VMEM)
    kernel = functools.partial(_decoder_kernel, T=T, B=B)
    y = pl.pallas_call(
        kernel,
        out_shape=jax.ShapeDtypeStruct((B, T * O), jnp.float32),
        in_specs=[vmem] * 6,
        out_specs=vmem,
        scratch_shapes=[pltpu.VMEM((T * B, H), jnp.float32)],
    )(x, kparams["wih_t"], kparams["whh_t"], kparams["b"],
      kparams["wl_t"], kparams["bl"])

    return y.reshape(B, T, O)   # free reshape; no transpose dispatch


def decoder_reference(x, params):
    """Pure-JAX f32 reference mirroring torch.nn.LSTM (gate order i,f,g,o)
    + Linear + Tanh."""
    w_ih, w_hh, b_ih, b_hh, w_lin, b_lin = (
        params["w_ih"], params["w_hh"], params["b_ih"], params["b_hh"],
        params["w_lin"], params["b_lin"],
    )
    B, T, D = x.shape
    H = w_hh.shape[1]

    def step(carry, xt):
        h, c = carry
        gates = xt @ w_ih.T + h @ w_hh.T + b_ih + b_hh
        i = jax.nn.sigmoid(gates[:, 0 * H:1 * H])
        f = jax.nn.sigmoid(gates[:, 1 * H:2 * H])
        g = jnp.tanh(gates[:, 2 * H:3 * H])
        o = jax.nn.sigmoid(gates[:, 3 * H:4 * H])
        c_new = f * c + i * g
        h_new = o * jnp.tanh(c_new)
        return (h_new, c_new), h_new

    x_tm = jnp.transpose(x, (1, 0, 2))
    (_, _), hs = lax.scan(step, (jnp.zeros((B, H)), jnp.zeros((B, H))), x_tm)
    out = jnp.transpose(hs, (1, 0, 2))                 # (B, T, H)
    return jnp.tanh(out @ w_lin.T + b_lin)


def init_params(key, input_dim, hidden, out_dim):
    """Deterministic synthetic parameters (PyTorch-style uniform init)."""
    ks = jax.random.split(key, 6)
    s = 1.0 / np.sqrt(hidden)
    u = lambda k, shape: jax.random.uniform(k, shape, jnp.float32, -s, s)
    return {
        "w_ih": u(ks[0], (4 * hidden, input_dim)),     # LSTM weight_ih_l0
        "w_hh": u(ks[1], (4 * hidden, hidden)),        # LSTM weight_hh_l0
        "b_ih": u(ks[2], (4 * hidden,)),               # LSTM bias_ih_l0
        "b_hh": u(ks[3], (4 * hidden,)),               # LSTM bias_hh_l0
        "w_lin": u(ks[4], (out_dim, hidden)),          # Linear_1.weight
        "b_lin": u(ks[5], (out_dim,)),                 # Linear_1.bias
    }


if __name__ == "__main__":
    # Small shapes consistent with the module:
    #   config.dim (LSTM input)  = 32
    #   config.rd_dim_1 (hidden) = 32
    #   config.input_dim (out)   = 16
    B, T, D, H, O = 2, 8, 32, 32, 16

    key = jax.random.PRNGKey(0)
    kx, kp = jax.random.split(key)
    x = jax.random.normal(kx, (B, T, D), jnp.float32)
    params = init_params(kp, D, H, O)
    kparams = prepare_decoder_params(params)       # one-time layout prep

    y = jax.block_until_ready(decoder_forward(x, kparams))
    y_ref = jax.block_until_ready(decoder_reference(x, params))

    assert y.shape == (B, T, O)
    # Recurrence matmul runs with bf16 operands (f32 accumulation); observed
    # deviation vs the f32 reference is O(1e-3), so validate at 1e-2.
    np.testing.assert_allclose(np.asarray(y), np.asarray(y_ref),
                               rtol=1e-2, atol=1e-2)
    print("KERNEL_OK")
</pallas_src>

<mosaic_0001>
module attributes {stable_mosaic.version = 11 : i64} {
  func.func @_decoder_kernel(%arg0: memref<2x8x32xf32, #tpu.memory_space<vmem>>, %arg1: memref<32x128xf32, #tpu.memory_space<vmem>>, %arg2: memref<32x128xbf16, #tpu.memory_space<vmem>>, %arg3: memref<1x128xf32, #tpu.memory_space<vmem>>, %arg4: memref<32x16xf32, #tpu.memory_space<vmem>>, %arg5: memref<1x16xf32, #tpu.memory_space<vmem>>, %arg6: memref<2x128xf32, #tpu.memory_space<vmem>>, %arg7: memref<16x32xf32, #tpu.memory_space<vmem>>) attributes {dimension_semantics = [], scalar_prefetch = 0 : i64, scratch_operands = 1 : i64, tpu.core_type = #tpu.core_type<tc>} {
    %c0 = arith.constant 0 : index
    %c0_0 = arith.constant 0 : index
    %0 = vector.load %arg1[%c0, %c0_0] : memref<32x128xf32, #tpu.memory_space<vmem>>, vector<32x128xf32>
    %c0_1 = arith.constant 0 : index
    %c0_2 = arith.constant 0 : index
    %1 = vector.load %arg2[%c0_1, %c0_2] : memref<32x128xbf16, #tpu.memory_space<vmem>>, vector<32x128xbf16>
    %c0_3 = arith.constant 0 : index
    %c0_4 = arith.constant 0 : index
    %2 = vector.load %arg4[%c0_3, %c0_4] : memref<32x16xf32, #tpu.memory_space<vmem>>, vector<32x16xf32>
    %c0_5 = arith.constant 0 : index
    %c0_6 = arith.constant 0 : index
    %3 = vector.load %arg5[%c0_5, %c0_6] : memref<1x16xf32, #tpu.memory_space<vmem>>, vector<1x16xf32>
    %c0_7 = arith.constant 0 : index
    %c0_8 = arith.constant 0 : index
    %c0_9 = arith.constant 0 : index
    %4 = vector.load %arg0[%c0_7, %c0_8, %c0_9] : memref<2x8x32xf32, #tpu.memory_space<vmem>>, vector<2x8x32xf32>
    %5 = vector.shape_cast %4 : vector<2x8x32xf32> to vector<16x32xf32>
    %cst = arith.constant dense<0.000000e+00> : vector<16x128xf32>
    %6 = tpu.matmul %5, %0, %cst {dimension_numbers = #tpu.dot_dimension_numbers<[1], [0], [0], [1], [0, 0, 1, 1], [], []>} : vector<16x32xf32>, vector<32x128xf32>, vector<16x128xf32> -> vector<16x128xf32>
    %c0_10 = arith.constant 0 : index
    %c0_11 = arith.constant 0 : index
    %7 = vector.load %arg3[%c0_10, %c0_11] : memref<1x128xf32, #tpu.memory_space<vmem>>, vector<1x128xf32>
    %8 = vector.broadcast %7 : vector<1x128xf32> to vector<16x128xf32>
    %9 = arith.addf %6, %8 : vector<16x128xf32>
    %10 = vector.shape_cast %9 : vector<16x128xf32> to vector<2x8x128xf32>
    %11 = tpu.iota {dimensions = array<i32: 1>} : vector<2x128xi32>
    %c64_i32 = arith.constant 64 : i32
    %12 = vector.broadcast %c64_i32 : i32 to vector<2x128xi32>
    %13 = arith.cmpi sge, %11, %12 : vector<2x128xi32>
    %c96_i32 = arith.constant 96 : i32
    %14 = vector.broadcast %c96_i32 : i32 to vector<2x128xi32>
    %15 = arith.cmpi slt, %11, %14 : vector<2x128xi32>
    %16 = arith.andi %13, %15 : vector<2x128xi1>
    %cst_12 = arith.constant 1.000000e+00 : f32
    %cst_13 = arith.constant 5.000000e-01 : f32
    %17 = vector.broadcast %cst_12 : f32 to vector<2x128xf32>
    %18 = vector.broadcast %cst_13 : f32 to vector<2x128xf32>
    %19 = arith.select %16, %17, %18 : vector<2x128xi1>, vector<2x128xf32>
    %cst_14 = arith.constant 0.000000e+00 : f32
    %cst_15 = arith.constant 5.000000e-01 : f32
    %20 = vector.broadcast %cst_14 : f32 to vector<2x128xf32>
    %21 = vector.broadcast %cst_15 : f32 to vector<2x128xf32>
    %22 = arith.select %16, %20, %21 : vector<2x128xi1>, vector<2x128xf32>
    %cst_16 = arith.constant 0.000000e+00 : f32
    %23 = vector.broadcast %cst_16 : f32 to vector<2x32xf32>
    %cst_17 = arith.constant 0.000000e+00 : f32
    %24 = vector.broadcast %cst_17 : f32 to vector<2x32xf32>
    %25 = vector.extract_strided_slice %10 {offsets = [0, 0, 0], sizes = [2, 1, 128], strides = [1, 1, 1]} : vector<2x8x128xf32> to vector<2x1x128xf32>
    %26 = vector.shape_cast %25 : vector<2x1x128xf32> to vector<2x128xf32>
    %27 = arith.truncf %23 : vector<2x32xf32> to vector<2x32xbf16>
    %cst_18 = arith.constant dense<0.000000e+00> : vector<2x128xf32>
    %28 = tpu.matmul %27, %1, %cst_18 {dimension_numbers = #tpu.dot_dimension_numbers<[1], [0], [0], [1], [0, 0, 1, 1], [], []>} : vector<2x32xbf16>, vector<32x128xbf16>, vector<2x128xf32> -> vector<2x128xf32>
    %29 = arith.addf %26, %28 : vector<2x128xf32>
    %30 = arith.mulf %29, %19 : vector<2x128xf32>
    %31 = math.tanh %30 : vector<2x128xf32>
    %32 = arith.mulf %31, %19 : vector<2x128xf32>
    %33 = arith.addf %32, %22 : vector<2x128xf32>
    %34 = vector.extract_strided_slice %33 {offsets = [0, 0], sizes = [2, 32], strides = [1, 1]} : vector<2x128xf32> to vector<2x32xf32>
    %35 = vector.extract_strided_slice %33 {offsets = [0, 32], sizes = [2, 32], strides = [1, 1]} : vector<2x128xf32> to vector<2x32xf32>
    %36 = vector.extract_strided_slice %33 {offsets = [0, 64], sizes = [2, 32], strides = [1, 1]} : vector<2x128xf32> to vector<2x32xf32>
    %37 = vector.extract_strided_slice %33 {offsets = [0, 96], sizes = [2, 32], strides = [1, 1]} : vector<2x128xf32> to vector<2x32xf32>
    %38 = arith.mulf %35, %24 : vector<2x32xf32>
    %39 = arith.mulf %34, %36 : vector<2x32xf32>
    %40 = arith.addf %38, %39 : vector<2x32xf32>
    %41 = math.tanh %40 : vector<2x32xf32>
    %42 = arith.mulf %37, %41 : vector<2x32xf32>
    %c0_19 = arith.constant 0 : index
    %c0_20 = arith.constant 0 : index
    %43 = vector.load %arg7[%c0_19, %c0_20] : memref<16x32xf32, #tpu.memory_space<vmem>>, vector<2x32xf32>
    tpu.vector_store %arg7[%c0_19, %c0_20], %42 {strides = array<i32>} : memref<16x32xf32, #tpu.memory_space<vmem>>, vector<2x32xf32>,
    %44 = vector.extract_strided_slice %10 {offsets = [0, 1, 0], sizes = [2, 1, 128], strides = [1, 1, 1]} : vector<2x8x128xf32> to vector<2x1x128xf32>
    %45 = vector.shape_cast %44 : vector<2x1x128xf32> to vector<2x128xf32>
    %46 = arith.truncf %42 : vector<2x32xf32> to vector<2x32xbf16>
    %cst_21 = arith.constant dense<0.000000e+00> : vector<2x128xf32>
    %47 = tpu.matmul %46, %1, %cst_21 {dimension_numbers = #tpu.dot_dimension_numbers<[1], [0], [0], [1], [0, 0, 1, 1], [], []>} : vector<2x32xbf16>, vector<32x128xbf16>, vector<2x128xf32> -> vector<2x128xf32>
    %48 = arith.addf %45, %47 : vector<2x128xf32>
    %49 = arith.mulf %48, %19 : vector<2x128xf32>
    %50 = math.tanh %49 : vector<2x128xf32>
    %51 = arith.mulf %50, %19 : vector<2x128xf32>
    %52 = arith.addf %51, %22 : vector<2x128xf32>
    %53 = vector.extract_strided_slice %52 {offsets = [0, 0], sizes = [2, 32], strides = [1, 1]} : vector<2x128xf32> to vector<2x32xf32>
    %54 = vector.extract_strided_slice %52 {offsets = [0, 32], sizes = [2, 32], strides = [1, 1]} : vector<2x128xf32> to vector<2x32xf32>
    %55 = vector.extract_strided_slice %52 {offsets = [0, 64], sizes = [2, 32], strides = [1, 1]} : vector<2x128xf32> to vector<2x32xf32>
    %56 = vector.extract_strided_slice %52 {offsets = [0, 96], sizes = [2, 32], strides = [1, 1]} : vector<2x128xf32> to vector<2x32xf32>
    %57 = arith.mulf %54, %40 : vector<2x32xf32>
    %58 = arith.mulf %53, %55 : vector<2x32xf32>
    %59 = arith.addf %57, %58 : vector<2x32xf32>
    %60 = math.tanh %59 : vector<2x32xf32>
    %61 = arith.mulf %56, %60 : vector<2x32xf32>
    %c2 = arith.constant 2 : index
    %c0_22 = arith.constant 0 : index
    %62 = vector.load %arg7[%c2, %c0_22] : memref<16x32xf32, #tpu.memory_space<vmem>>, vector<2x32xf32>
    tpu.vector_store %arg7[%c2, %c0_22], %61 {strides = array<i32>} : memref<16x32xf32, #tpu.memory_space<vmem>>, vector<2x32xf32>,
    %63 = vector.extract_strided_slice %10 {offsets = [0, 2, 0], sizes = [2, 1, 128], strides = [1, 1, 1]} : vector<2x8x128xf32> to vector<2x1x128xf32>
    %64 = vector.shape_cast %63 : vector<2x1x128xf32> to vector<2x128xf32>
    %65 = arith.truncf %61 : vector<2x32xf32> to vector<2x32xbf16>
    %cst_23 = arith.constant dense<0.000000e+00> : vector<2x128xf32>
    %66 = tpu.matmul %65, %1, %cst_23 {dimension_numbers = #tpu.dot_dimension_numbers<[1], [0], [0], [1], [0, 0, 1, 1], [], []>} : vector<2x32xbf16>, vector<32x128xbf16>, vector<2x128xf32> -> vector<2x128xf32>
    %67 = arith.addf %64, %66 : vector<2x128xf32>
    %68 = arith.mulf %67, %19 : vector<2x128xf32>
    %69 = math.tanh %68 : vector<2x128xf32>
    %70 = arith.mulf %69, %19 : vector<2x128xf32>
    %71 = arith.addf %70, %22 : vector<2x128xf32>
    %72 = vector.extract_strided_slice %71 {offsets = [0, 0], sizes = [2, 32], strides = [1, 1]} : vector<2x128xf32> to vector<2x32xf32>
    %73 = vector.extract_strided_slice %71 {offsets = [0, 32], sizes = [2, 32], strides = [1, 1]} : vector<2x128xf32> to vector<2x32xf32>
    %74 = vector.extract_strided_slice %71 {offsets = [0, 64], sizes = [2, 32], strides = [1, 1]} : vector<2x128xf32> to vector<2x32xf32>
    %75 = vector.extract_strided_slice %71 {offsets = [0, 96], sizes = [2, 32], strides = [1, 1]} : vector<2x128xf32> to vector<2x32xf32>
    %76 = arith.mulf %73, %59 : vector<2x32xf32>
    %77 = arith.mulf %72, %74 : vector<2x32xf32>
    %78 = arith.addf %76, %77 : vector<2x32xf32>
    %79 = math.tanh %78 : vector<2x32xf32>
    %80 = arith.mulf %75, %79 : vector<2x32xf32>
    %c4 = arith.constant 4 : index
    %c0_24 = arith.constant 0 : index
    %81 = vector.load %arg7[%c4, %c0_24] : memref<16x32xf32, #tpu.memory_space<vmem>>, vector<2x32xf32>
    tpu.vector_store %arg7[%c4, %c0_24], %80 {strides = array<i32>} : memref<16x32xf32, #tpu.memory_space<vmem>>, vector<2x32xf32>,
    %82 = vector.extract_strided_slice %10 {offsets = [0, 3, 0], sizes = [2, 1, 128], strides = [1, 1, 1]} : vector<2x8x128xf32> to vector<2x1x128xf32>
    %83 = vector.shape_cast %82 : vector<2x1x128xf32> to vector<2x128xf32>
    %84 = arith.truncf %80 : vector<2x32xf32> to vector<2x32xbf16>
    %cst_25 = arith.constant dense<0.000000e+00> : vector<2x128xf32>
    %85 = tpu.matmul %84, %1, %cst_25 {dimension_numbers = #tpu.dot_dimension_numbers<[1], [0], [0], [1], [0, 0, 1, 1], [], []>} : vector<2x32xbf16>, vector<32x128xbf16>, vector<2x128xf32> -> vector<2x128xf32>
    %86 = arith.addf %83, %85 : vector<2x128xf32>
    %87 = arith.mulf %86, %19 : vector<2x128xf32>
    %88 = math.tanh %87 : vector<2x128xf32>
    %89 = arith.mulf %88, %19 : vector<2x128xf32>
    %90 = arith.addf %89, %22 : vector<2x128xf32>
    %91 = vector.extract_strided_slice %90 {offsets = [0, 0], sizes = [2, 32], strides = [1, 1]} : vector<2x128xf32> to vector<2x32xf32>
    %92 = vector.extract_strided_slice %90 {offsets = [0, 32], sizes = [2, 32], strides = [1, 1]} : vector<2x128xf32> to vector<2x32xf32>
    %93 = vector.extract_strided_slice %90 {offsets = [0, 64], sizes = [2, 32], strides = [1, 1]} : vector<2x128xf32> to vector<2x32xf32>
    %94 = vector.extract_strided_slice %90 {offsets = [0, 96], sizes = [2, 32], strides = [1, 1]} : vector<2x128xf32> to vector<2x32xf32>
    %95 = arith.mulf %92, %78 : vector<2x32xf32>
    %96 = arith.mulf %91, %93 : vector<2x32xf32>
    %97 = arith.addf %95, %96 : vector<2x32xf32>
    %98 = math.tanh %97 : vector<2x32xf32>
    %99 = arith.mulf %94, %98 : vector<2x32xf32>
    %c6 = arith.constant 6 : index
    %c0_26 = arith.constant 0 : index
    %100 = vector.load %arg7[%c6, %c0_26] : memref<16x32xf32, #tpu.memory_space<vmem>>, vector<2x32xf32>
    tpu.vector_store %arg7[%c6, %c0_26], %99 {strides = array<i32>} : memref<16x32xf32, #tpu.memory_space<vmem>>, vector<2x32xf32>,
    %101 = vector.extract_strided_slice %10 {offsets = [0, 4, 0], sizes = [2, 1, 128], strides = [1, 1, 1]} : vector<2x8x128xf32> to vector<2x1x128xf32>
    %102 = vector.shape_cast %101 : vector<2x1x128xf32> to vector<2x128xf32>
    %103 = arith.truncf %99 : vector<2x32xf32> to vector<2x32xbf16>
    %cst_27 = arith.constant dense<0.000000e+00> : vector<2x128xf32>
    %104 = tpu.matmul %103, %1, %cst_27 {dimension_numbers = #tpu.dot_dimension_numbers<[1], [0], [0], [1], [0, 0, 1, 1], [], []>} : vector<2x32xbf16>, vector<32x128xbf16>, vector<2x128xf32> -> vector<2x128xf32>
    %105 = arith.addf %102, %104 : vector<2x128xf32>
    %106 = arith.mulf %105, %19 : vector<2x128xf32>
    %107 = math.tanh %106 : vector<2x128xf32>
    %108 = arith.mulf %107, %19 : vector<2x128xf32>
    %109 = arith.addf %108, %22 : vector<2x128xf32>
    %110 = vector.extract_strided_slice %109 {offsets = [0, 0], sizes = [2, 32], strides = [1, 1]} : vector<2x128xf32> to vector<2x32xf32>
    %111 = vector.extract_strided_slice %109 {offsets = [0, 32], sizes = [2, 32], strides = [1, 1]} : vector<2x128xf32> to vector<2x32xf32>
    %112 = vector.extract_strided_slice %109 {offsets = [0, 64], sizes = [2, 32], strides = [1, 1]} : vector<2x128xf32> to vector<2x32xf32>
    %113 = vector.extract_strided_slice %109 {offsets = [0, 96], sizes = [2, 32], strides = [1, 1]} : vector<2x128xf32> to vector<2x32xf32>
    %114 = arith.mulf %111, %97 : vector<2x32xf32>
    %115 = arith.mulf %110, %112 : vector<2x32xf32>
    %116 = arith.addf %114, %115 : vector<2x32xf32>
    %117 = math.tanh %116 : vector<2x32xf32>
    %118 = arith.mulf %113, %117 : vector<2x32xf32>
    %c8 = arith.constant 8 : index
    %c0_28 = arith.constant 0 : index
    %119 = vector.load %arg7[%c8, %c0_28] : memref<16x32xf32, #tpu.memory_space<vmem>>, vector<2x32xf32>
    tpu.vector_store %arg7[%c8, %c0_28], %118 {strides = array<i32>} : memref<16x32xf32, #tpu.memory_space<vmem>>, vector<2x32xf32>,
    %120 = vector.extract_strided_slice %10 {offsets = [0, 5, 0], sizes = [2, 1, 128], strides = [1, 1, 1]} : vector<2x8x128xf32> to vector<2x1x128xf32>
    %121 = vector.shape_cast %120 : vector<2x1x128xf32> to vector<2x128xf32>
    %122 = arith.truncf %118 : vector<2x32xf32> to vector<2x32xbf16>
    %cst_29 = arith.constant dense<0.000000e+00> : vector<2x128xf32>
    %123 = tpu.matmul %122, %1, %cst_29 {dimension_numbers = #tpu.dot_dimension_numbers<[1], [0], [0], [1], [0, 0, 1, 1], [], []>} : vector<2x32xbf16>, vector<32x128xbf16>, vector<2x128xf32> -> vector<2x128xf32>
    %124 = arith.addf %121, %123 : vector<2x128xf32>
    %125 = arith.mulf %124, %19 : vector<2x128xf32>
    %126 = math.tanh %125 : vector<2x128xf32>
    %127 = arith.mulf %126, %19 : vector<2x128xf32>
    %128 = arith.addf %127, %22 : vector<2x128xf32>
    %129 = vector.extract_strided_slice %128 {offsets = [0, 0], sizes = [2, 32], strides = [1, 1]} : vector<2x128xf32> to vector<2x32xf32>
    %130 = vector.extract_strided_slice %128 {offsets = [0, 32], sizes = [2, 32], strides = [1, 1]} : vector<2x128xf32> to vector<2x32xf32>
    %131 = vector.extract_strided_slice %128 {offsets = [0, 64], sizes = [2, 32], strides = [1, 1]} : vector<2x128xf32> to vector<2x32xf32>
    %132 = vector.extract_strided_slice %128 {offsets = [0, 96], sizes = [2, 32], strides = [1, 1]} : vector<2x128xf32> to vector<2x32xf32>
    %133 = arith.mulf %130, %116 : vector<2x32xf32>
    %134 = arith.mulf %129, %131 : vector<2x32xf32>
    %135 = arith.addf %133, %134 : vector<2x32xf32>
    %136 = math.tanh %135 : vector<2x32xf32>
    %137 = arith.mulf %132, %136 : vector<2x32xf32>
    %c10 = arith.constant 10 : index
    %c0_30 = arith.constant 0 : index
    %138 = vector.load %arg7[%c10, %c0_30] : memref<16x32xf32, #tpu.memory_space<vmem>>, vector<2x32xf32>
    tpu.vector_store %arg7[%c10, %c0_30], %137 {strides = array<i32>} : memref<16x32xf32, #tpu.memory_space<vmem>>, vector<2x32xf32>,
    %139 = vector.extract_strided_slice %10 {offsets = [0, 6, 0], sizes = [2, 1, 128], strides = [1, 1, 1]} : vector<2x8x128xf32> to vector<2x1x128xf32>
    %140 = vector.shape_cast %139 : vector<2x1x128xf32> to vector<2x128xf32>
    %141 = arith.truncf %137 : vector<2x32xf32> to vector<2x32xbf16>
    %cst_31 = arith.constant dense<0.000000e+00> : vector<2x128xf32>
    %142 = tpu.matmul %141, %1, %cst_31 {dimension_numbers = #tpu.dot_dimension_numbers<[1], [0], [0], [1], [0, 0, 1, 1], [], []>} : vector<2x32xbf16>, vector<32x128xbf16>, vector<2x128xf32> -> vector<2x128xf32>
    %143 = arith.addf %140, %142 : vector<2x128xf32>
    %144 = arith.mulf %143, %19 : vector<2x128xf32>
    %145 = math.tanh %144 : vector<2x128xf32>
    %146 = arith.mulf %145, %19 : vector<2x128xf32>
    %147 = arith.addf %146, %22 : vector<2x128xf32>
    %148 = vector.extract_strided_slice %147 {offsets = [0, 0], sizes = [2, 32], strides = [1, 1]} : vector<2x128xf32> to vector<2x32xf32>
    %149 = vector.extract_strided_slice %147 {offsets = [0, 32], sizes = [2, 32], strides = [1, 1]} : vector<2x128xf32> to vector<2x32xf32>
    %150 = vector.extract_strided_slice %147 {offsets = [0, 64], sizes = [2, 32], strides = [1, 1]} : vector<2x128xf32> to vector<2x32xf32>
    %151 = vector.extract_strided_slice %147 {offsets = [0, 96], sizes = [2, 32], strides = [1, 1]} : vector<2x128xf32> to vector<2x32xf32>
    %152 = arith.mulf %149, %135 : vector<2x32xf32>
    %153 = arith.mulf %148, %150 : vector<2x32xf32>
    %154 = arith.addf %152, %153 : vector<2x32xf32>
    %155 = math.tanh %154 : vector<2x32xf32>
    %156 = arith.mulf %151, %155 : vector<2x32xf32>
    %c12 = arith.constant 12 : index
    %c0_32 = arith.constant 0 : index
    %157 = vector.load %arg7[%c12, %c0_32] : memref<16x32xf32, #tpu.memory_space<vmem>>, vector<2x32xf32>
    tpu.vector_store %arg7[%c12, %c0_32], %156 {strides = array<i32>} : memref<16x32xf32, #tpu.memory_space<vmem>>, vector<2x32xf32>,
    %158 = vector.extract_strided_slice %10 {offsets = [0, 7, 0], sizes = [2, 1, 128], strides = [1, 1, 1]} : vector<2x8x128xf32> to vector<2x1x128xf32>
    %159 = vector.shape_cast %158 : vector<2x1x128xf32> to vector<2x128xf32>
    %160 = arith.truncf %156 : vector<2x32xf32> to vector<2x32xbf16>
    %cst_33 = arith.constant dense<0.000000e+00> : vector<2x128xf32>
    %161 = tpu.matmul %160, %1, %cst_33 {dimension_numbers = #tpu.dot_dimension_numbers<[1], [0], [0], [1], [0, 0, 1, 1], [], []>} : vector<2x32xbf16>, vector<32x128xbf16>, vector<2x128xf32> -> vector<2x128xf32>
    %162 = arith.addf %159, %161 : vector<2x128xf32>
    %163 = arith.mulf %162, %19 : vector<2x128xf32>
    %164 = math.tanh %163 : vector<2x128xf32>
    %165 = arith.mulf %164, %19 : vector<2x128xf32>
    %166 = arith.addf %165, %22 : vector<2x128xf32>
    %167 = vector.extract_strided_slice %166 {offsets = [0, 0], sizes = [2, 32], strides = [1, 1]} : vector<2x128xf32> to vector<2x32xf32>
    %168 = vector.extract_strided_slice %166 {offsets = [0, 32], sizes = [2, 32], strides = [1, 1]} : vector<2x128xf32> to vector<2x32xf32>
    %169 = vector.extract_strided_slice %166 {offsets = [0, 64], sizes = [2, 32], strides = [1, 1]} : vector<2x128xf32> to vector<2x32xf32>
    %170 = vector.extract_strided_slice %166 {offsets = [0, 96], sizes = [2, 32], strides = [1, 1]} : vector<2x128xf32> to vector<2x32xf32>
    %171 = arith.mulf %168, %154 : vector<2x32xf32>
    %172 = arith.mulf %167, %169 : vector<2x32xf32>
    %173 = arith.addf %171, %172 : vector<2x32xf32>
    %174 = math.tanh %173 : vector<2x32xf32>
    %175 = arith.mulf %170, %174 : vector<2x32xf32>
    %c14 = arith.constant 14 : index
    %c0_34 = arith.constant 0 : index
    %176 = vector.load %arg7[%c14, %c0_34] : memref<16x32xf32, #tpu.memory_space<vmem>>, vector<2x32xf32>
    tpu.vector_store %arg7[%c14, %c0_34], %175 {strides = array<i32>} : memref<16x32xf32, #tpu.memory_space<vmem>>, vector<2x32xf32>,
    %c0_35 = arith.constant 0 : index
    %c0_36 = arith.constant 0 : index
    %177 = vector.load %arg7[%c0_35, %c0_36] : memref<16x32xf32, #tpu.memory_space<vmem>>, vector<16x32xf32>
    %cst_37 = arith.constant dense<0.000000e+00> : vector<16x16xf32>
    %178 = tpu.matmul %177, %2, %cst_37 {dimension_numbers = #tpu.dot_dimension_numbers<[1], [0], [0], [1], [0, 0, 1, 1], [], []>} : vector<16x32xf32>, vector<32x16xf32>, vector<16x16xf32> -> vector<16x16xf32>
    %179 = vector.broadcast %3 : vector<1x16xf32> to vector<16x16xf32>
    %180 = arith.addf %178, %179 : vector<16x16xf32>
    %181 = math.tanh %180 : vector<16x16xf32>
    %182 = vector.extract_strided_slice %181 {offsets = [0, 0], sizes = [2, 16], strides = [1, 1]} : vector<16x16xf32> to vector<2x16xf32>
    %183 = vector.extract_strided_slice %181 {offsets = [2, 0], sizes = [2, 16], strides = [1, 1]} : vector<16x16xf32> to vector<2x16xf32>
    %184 = vector.extract_strided_slice %181 {offsets = [4, 0], sizes = [2, 16], strides = [1, 1]} : vector<16x16xf32> to vector<2x16xf32>
    %185 = vector.extract_strided_slice %181 {offsets = [6, 0], sizes = [2, 16], strides = [1, 1]} : vector<16x16xf32> to vector<2x16xf32>
    %186 = vector.extract_strided_slice %181 {offsets = [8, 0], sizes = [2, 16], strides = [1, 1]} : vector<16x16xf32> to vector<2x16xf32>
    %187 = vector.extract_strided_slice %181 {offsets = [10, 0], sizes = [2, 16], strides = [1, 1]} : vector<16x16xf32> to vector<2x16xf32>
    %188 = vector.extract_strided_slice %181 {offsets = [12, 0], sizes = [2, 16], strides = [1, 1]} : vector<16x16xf32> to vector<2x16xf32>
    %189 = vector.extract_strided_slice %181 {offsets = [14, 0], sizes = [2, 16], strides = [1, 1]} : vector<16x16xf32> to vector<2x16xf32>
    %190 = tpu.concatenate %182, %183, %184, %185, %186, %187, %188, %189 in 1 : vector<2x16xf32>, vector<2x16xf32>, vector<2x16xf32>, vector<2x16xf32>, vector<2x16xf32>, vector<2x16xf32>, vector<2x16xf32>, vector<2x16xf32> -> vector<2x128xf32>
    %c0_38 = arith.constant 0 : index
    %c0_39 = arith.constant 0 : index
    %191 = vector.load %arg6[%c0_38, %c0_39] : memref<2x128xf32, #tpu.memory_space<vmem>>, vector<2x128xf32>
    tpu.vector_store %arg6[%c0_38, %c0_39], %190 {strides = array<i32>} : memref<2x128xf32, #tpu.memory_space<vmem>>, vector<2x128xf32>,
    return
  }
}

</mosaic_0001>

<bundles_post_ra>
// kernel: decoder_forward.1
= control target key start
LH: loop header
LB: loop body
LE: loop exit
PB: predicated region body
PF: predicated region fallthrough
CT: control target
= control target key end

     0   :  { %11 = vsyncpa [#allocation4], 0  ;;  %s1501_s21 = smov [#allocation3]   ;;  %s1838_s0 = inlined_call_operand.vmem [shape: f32[2,8,32], index: 0, kind: input, shape index: {}]   ;;  %s1839_s1 = inlined_call_operand.vmem [shape: f32[32,128], index: 1, kind: input, shape index: {}]   ;;  %s1840_s2 = inlined_call_operand.hbm [shape: bf16[32,128], index: 2, kind: input, shape index: {}]   ;;  %s1841_s3 = inlined_call_operand.vmem [shape: f32[1,128], index: 3, kind: input, shape index: {}]   ;;  %s1842_s4 = inlined_call_operand.vmem [shape: f32[32,16], index: 4, kind: input, shape index: {}]   ;;  %s1843_s5 = inlined_call_operand.vmem [shape: f32[1,16], index: 5, kind: input, shape index: {}]   ;;  %s1844_s6 = inlined_call_operand.vmem [shape: f32[2,128], index: 6, kind: output, shape index: {}]  }
   0x1   :  { %s21_s22 = sshll.u32 %s1501_s21, 4  ;;  %s1477_s25 = scalar_lea.hbm %s1840_s2, 256  ;;  %s22_s22 = int_to_ptr.vmem [resolvable:$true] %s21_s22 }
   0x2   :  { %p1478_p0 = scmp.ne.s32.totalorder %s1840_s2, %s1477_s25  ;;  %p1481_p1 = scmp.lt.u32.totalorder %s1477_s25, %s1840_s2 }
   0x4   :  { %p1483_p2 = pnand %p1481_p1, %p1478_p0 }
   0x6   :  { %1486 = shalt.err (!%p1483_p2)
}
   0x7   :  { %s1487_s30 = scalar_lea.vmem %s22_s22, 256  ;;  %p1492_p4 = scmp.lt.s32.totalorder %s22_s22, %s22_s22 }
   0x8   :  { %p1488_p3 = scmp.ne.s32.totalorder %s22_s22, %s1487_s30  ;;  %p1493_p5 = scmp.lt.s32.totalorder %s1487_s30, %s1487_s30 }
   0xa   :  { %p1494_p6 = por %p1493_p5, %p1492_p4 }
   0xc   :  { %p1495_p7 = pnand %p1494_p6, %p1488_p3 }
   0xe   :  { %1498 = shalt.err (!%p1495_p7)
}
   0xf   :  { %s1502_s7 = smov 64   ;;  %s1503_s8 = smov 4  }
  0x10   :  { %27 = dma.hbm_to_vmem [thread:$0]  %s1840_s2, 256, %s22_s22, [#allocation4], %s1502_s7, %s1502_s7, %s1503_s8  }
  0x11   :  { %1499 = dma.done.wait [#allocation4], 256  }
  0x12   :  { %1500 = vsyncadd [#allocation4], 4294967040  ;;  %v1504_v0 = vmov 0.0   ;;  %vm1505_vm0 = vmmov 0   ;;  %v38_v1 = vld [vmem:[%s1839_s1] sm:$0xff]  ;;  %v39_v2 = vld [vmem:[%s1839_s1 + $0x8] sm:$0xff]  ;;  %v142_v12 = vlaneseq }
  0x13   :  { %1303 = vmatprep.subr.bf16.mxu1 %v1504_v0  ;;  %1307 = vmatprep.mubr.msk.bf16.mxu1 %vm1505_vm0, %v1504_v0  ;;  %v1378_v3 = vpack.c.bf16 %v39_v2, %v38_v1  ;;  %v1572_v4 = vld [vmem:[#allocation3] sm:$0xff]   ;;  %v41_v6 = vld [vmem:[%s1839_s1 + $0x18] sm:$0xff]  ;;  %vm60_vm1 = vcmask 261120   ;;  %v51_v9 = vld [vmem:[%s1838_s0] sm:$0xff]  ;;  %v1506_v11 = vmov 0   ;;  %v1507_v25 = vmov 0.5  }
  0x14   :  { %v40_v5 = vld [vmem:[%s1839_s1 + $0x10] sm:$0xff]  ;;  %1304 = vmatpush3.bf16.msra.mxu1 %v1572_v4  ;;  %v1581_v8 = vld [vmem:[#allocation3 + $0x8] sm:$0xff]   ;;  %1300 = vmatprep.mubr.msk.f32.mxu0 %vm60_vm1, %v51_v9  ;;  %v52_v10 = vld [vmem:[%s1838_s0 + $0x8] sm:$0xff]  ;;  %v143_v13 = vand.u32 127, %v142_v12  ;;  %vm255_vm5 = vcmask 1041409   ;;  %vm373_vm6 = vcmask 1042434  }
  0x15   :  { %1379 = vmatprep.subr.bf16.mxu0 %v1378_v3  ;;  %v1382_v7 = vpack.c.bf16 %v41_v6, %v40_v5  ;;  %1305 = vmatprep.subr.bf16.mxu1 %v1504_v0  ;;  %v1241_v14 = vld [vmem:[%s1841_s3] ss:$0 sm:$0xff]  ;;  %s1508_s3 = smov 32   ;;  %vm492_vm7 = vcmask 1043459   ;;  %vm612_vm8 = vcmask 1044484   ;;  %vm732_vm9 = vcmask 1045509  }
  0x16   :  { %1381 = vmatpush3.bf16.msra.mxu0 %v1378_v3  ;;  %vm144_vm2 = vcmp.ge.s32.totalorder %v143_v13, 64  ;;  %vm145_vm3 = vcmp.lt.s32.totalorder %v143_v13, 96  ;;  %vm852_vm10 = vcmask 1046534   ;;  %vm972_vm11 = vcmask 1047559   ;;  %s1509_s8 = smov 80   ;;  %s1510_s9 = smov 16  }
  0x17   :  { %1383 = vmatprep.subr.bf16.mxu0 %v1382_v7  ;;  %vm1610_vm4 = vmand %vm144_vm2, %vm145_vm3  ;;  %vm378_vm12 = vcmask 256001   ;;  %vm260_vm13 = vcmask 254976   ;;  %vm617_vm14 = vcmask 258051   ;;  %vm497_vm15 = vcmask 257026   ;;  %s1512_s10 = smov 48   ;;  %s1513_s11 = smov 112  }
  0x18   :  { %1306 = vmatpush3.bf16.msra.mxu1 %v1581_v8  ;;  %v1620_v26 = vsel %vm1610_vm4, 1.0, %v1507_v25  ;;  %v1628_v32 = vsel %vm1610_vm4, 0.0, %v1507_v25  ;;  %vm737_vm2 = vcmask 259076   ;;  %vm977_vm3 = vcmask 261126  }
  0x19   :  { %1319 = vmatprep.subr.bf16.mxu1 %v1504_v0  ;;  %vm1098_vm4 = vcmask 261127  }
  0x1a   :  { %1385 = vmatpush3.bf16.msra.mxu0 %v1382_v7 }
  0x1b   :  { %1311 = vmatprep.subr.bf16.mxu0 %v1504_v0  ;;  %1308 = vmatmul.mubr.bf16.vlgmr.msra.gmra.mrb[0].mxu1 %v1506_v11 }
  0x1c   :  { %1320 = vmatpush3.bf16.msra.mxu1 %v1572_v4  ;;  %1323 = vmatprep.mubr.msk.bf16.mxu1 %vm1505_vm0, %v1504_v0 }
  0x1d   :  { %1301 = vmatmul.mubr.msk.f32.vlgmr.msra.gmra.mrb[0].mxu0 %vm60_vm1, %v52_v10  ;;  %1321 = vmatprep.subr.bf16.mxu1 %v1504_v0 }
  0x1e   :  { %1312 = vmatpush3.bf16.msra.mxu0 %v1572_v4  ;;  %1315 = vmatprep.mubr.msk.bf16.mxu0 %vm1505_vm0, %v1504_v0 }
  0x1f   :  { %1313 = vmatprep.subr.bf16.mxu0 %v1504_v0 }
  0x20   :  { %1322 = vmatpush3.bf16.msra.mxu1 %v1581_v8 }
  0x21   :  { %1335 = vmatprep.subr.bf16.mxu1 %v1504_v0 }
  0x22   :  { %1314 = vmatpush3.bf16.msra.mxu0 %v1581_v8 }
  0x23   :  { %1327 = vmatprep.subr.bf16.mxu0 %v1504_v0 }
  0xee   :  { %v198_v15 = vpop.f32.mrb[0].mxu1 }
  0xef   :  { %v205_v17 = vrot.slane %v198_v15, 1  ;;  %v1309_v19 = vpop.f32.mrb[1].mxu1 }
  0xf0   :  { %v1302_v18 = vpop.f32.mrb[0].mxu0  ;;  %v201_v22 = vpop.f32.mrb[2].mxu1 }
  0xf1   :  { %v1614_v20 = vadd.f32 %v1302_v18, %v1241_v14  ;;  %v133_v21 = vpop.f32.mrb[1].mxu0  ;;  %v1310_v24 = vpop.f32.mrb[3].mxu1 }
  0xf2   :  { %v1616_v23 = vadd.f32 %v1241_v14, %v133_v21 }
  0xf3   :  { %v209_v27 = vadd.f32 %v205_v17, %v1614_v20 }
  0xf4   :  { %v208_v28 = vadd.f32 %v198_v15, %v1616_v23 }
  0xf5   :  { %v211_v29 = vmul.f32 %v209_v27, %v1620_v26 }
  0xf6   :  { %v210_v30 = vmul.f32 %v208_v28, %v1620_v26 }
  0xf7   :  { %1409 = vtanh.f32 %v211_v29 }
  0xf8   :  { %1411 = vtanh.f32 %v210_v30 }
 0x101   :  { %v1410_v31 = vpop.eup %1409 }
 0x102   :  { %v1412_v33 = vpop.eup %1411  ;;  %v215_v34 = vmul.f32 %v1410_v31, %v1620_v26 }
 0x103   :  { %v214_v36 = vmul.f32 %v1412_v33, %v1620_v26 }
 0x104   :  { %v217_v35 = vadd.f32 %v215_v34, %v1628_v32 }
 0x105   :  { %v216_v37 = vadd.f32 %v214_v36, %v1628_v32 }
 0x106   :  { %224 = vrot.lane.b32.xlu0 %v217_v35, %s1502_s7  ;;  %v219_v42 = vmul.f32 0.0, %v217_v35 }
 0x107   :  { %v218_v45 = vmul.f32 0.0, %v216_v37 }
 0x10a   :  { %222 = vrot.lane.b32.xlu0 %v216_v37, %s1502_s7 }
 0x178   :  { %v225_v38 = vpop.permute.xlu0 %224 }
 0x179   :  { %v229_v39 = vmul.f32 %v225_v38, %v217_v35 }
 0x17b   :  { %234 = vrot.lane.b32.xlu1 %v229_v39, %s1508_s3 }
 0x17c   :  { %v223_v40 = vpop.permute.xlu0 %222 }
 0x17d   :  { %v228_v41 = vmul.f32 %v223_v40, %v216_v37 }
 0x17f   :  { %232 = vrot.lane.b32.xlu1 %v228_v41, %s1508_s3 }
 0x1ed   :  { %v235_v43 = vpop.permute.xlu1 %234 }
 0x1ee   :  { %v239_v44 = vadd.f32 %v235_v43, %v219_v42 }
 0x1f0   :  { %1413 = vtanh.f32 %v239_v44  ;;  %v333_v24 = vrot.slane %v239_v44, 7 }
 0x1f1   :  { %v233_v46 = vpop.permute.xlu1 %232 }
 0x1f2   :  { %v238_v47 = vadd.f32 %v233_v46, %v218_v45 }
 0x1f4   :  { %1415 = vtanh.f32 %v238_v47  ;;  %v332_v25 = vrot.slane %v238_v47, 7 }
 0x1fa   :  { %v1414_v48 = vpop.eup %1413 }
 0x1fb   :  { %246 = vrot.lane.b32.xlu0 %v1414_v48, %s1502_s7 }
 0x1fe   :  { %v1416_v49 = vpop.eup %1415 }
 0x1ff   :  { %244 = vrot.lane.b32.xlu1 %v1416_v49, %s1502_s7 }
 0x26d   :  { %v247_v50 = vpop.permute.xlu0 %246 }
 0x26e   :  { %v251_v51 = vmul.f32 %v247_v50, %v217_v35 }
 0x270   :  { %v263_v52 = vpack.c.bf16 %v251_v51, %v251_v51  ;;  %v254_v54 = vrot.slane %v251_v51, 7 }
 0x271   :  { %v245_v53 = vpop.permute.xlu1 %244 }
 0x272   :  { %v267_v55 = vunpack.c.l.b16 %v263_v52  ;;  %v250_v56 = vmul.f32 %v245_v53, %v216_v37 }
 0x274   :  { %v262_v57 = vpack.c.bf16 %v250_v56, %v250_v56  ;;  %v1641_v58 = vsel %vm255_vm5, %v254_v54, %v250_v56  ;;  %v268_v59 = vrot.slane %v267_v55, 7 }
 0x276   :  { %v266_v60 = vunpack.c.l.b16 %v262_v57 }
 0x278   :  { %v269_v61 = vsel %vm255_vm5, %v268_v59, %v266_v60 }
 0x279   :  { %v270_v62 = vpack.c.b16 %v269_v61, %v269_v61 }
 0x27b   :  { %271 = vrot.lane.b32.xlu0 %v270_v62, %s1508_s3 }
 0x2ed   :  { %v272_v63 = vpop.permute.xlu0 %271 }
 0x2ee   :  { %1316 = vmatmul.mubr.msk.bf16.vlgmr.msra.gmra.mrb[4].mxu0 %vm60_vm1, %v272_v63 }
 0x2ef   :  { %1328 = vmatpush3.bf16.msra.mxu0 %v1572_v4  ;;  %1331 = vmatprep.mubr.msk.bf16.mxu0 %vm1505_vm0, %v1504_v0 }
 0x2f0   :  { %1329 = vmatprep.subr.bf16.mxu0 %v1504_v0 }
 0x2f3   :  { %1330 = vmatpush3.bf16.msra.mxu0 %v1581_v8 }
 0x2f4   :  { %1343 = vmatprep.subr.bf16.mxu0 %v1504_v0 }
 0x3c1   :  { %v310_v1 = vpop.f32.mrb[4].mxu0 }
 0x3c2   :  { %v317_v2 = vrot.slane %v310_v1, 7  ;;  %v321_v3 = vadd.f32 %v310_v1, %v1614_v20  ;;  %v1317_v5 = vpop.f32.mrb[5].mxu0 }
 0x3c3   :  { %v313_v6 = vpop.f32.mrb[6].mxu0 }
 0x3c4   :  { %v320_v7 = vadd.f32 %v317_v2, %v1616_v23  ;;  %v323_v9 = vmul.f32 %v321_v3, %v1620_v26  ;;  %v1318_v10 = vpop.f32.mrb[7].mxu0 }
 0x3c6   :  { %v322_v11 = vmul.f32 %v320_v7, %v1620_v26  ;;  %1417 = vtanh.f32 %v323_v9 }
 0x3c8   :  { %1419 = vtanh.f32 %v322_v11 }
 0x3d0   :  { %v1418_v12 = vpop.eup %1417 }
 0x3d1   :  { %v327_v13 = vmul.f32 %v1418_v12, %v1620_v26 }
 0x3d2   :  { %v1420_v14 = vpop.eup %1419 }
 0x3d3   :  { %v329_v15 = vadd.f32 %v327_v13, %v1628_v32  ;;  %v326_v16 = vmul.f32 %v1420_v14, %v1620_v26 }
 0x3d5   :  { %342 = vrot.lane.b32.xlu0 %v329_v15, %s1502_s7  ;;  %v328_v17 = vadd.f32 %v326_v16, %v1628_v32  ;;  %v337_v27 = vmul.f32 %v333_v24, %v329_v15 }
 0x3d7   :  { %340 = vrot.lane.b32.xlu1 %v328_v17, %s1502_s7  ;;  %v336_v30 = vmul.f32 %v332_v25, %v328_v17 }
 0x447   :  { %v343_v18 = vpop.permute.xlu0 %342 }
 0x448   :  { %v347_v19 = vmul.f32 %v343_v18, %v329_v15 }
 0x449   :  { %v341_v21 = vpop.permute.xlu1 %340 }
 0x44a   :  { %v346_v22 = vmul.f32 %v341_v21, %v328_v17  ;;  %352 = vrot.lane.b32.xlu0 %v347_v19, %s1508_s3 }
 0x44c   :  { %350 = vrot.lane.b32.xlu1 %v346_v22, %s1508_s3 }
 0x4bc   :  { %v353_v28 = vpop.permute.xlu0 %352 }
 0x4bd   :  { %v357_v29 = vadd.f32 %v353_v28, %v337_v27 }
 0x4be   :  { %v351_v31 = vpop.permute.xlu1 %350 }
 0x4bf   :  { %1421 = vtanh.f32 %v357_v29  ;;  %v356_v33 = vadd.f32 %v351_v31, %v336_v30  ;;  %v452_v11 = vrot.slane %v357_v29, 7 }
 0x4c1   :  { %1423 = vtanh.f32 %v356_v33  ;;  %v451_v10 = vrot.slane %v356_v33, 7 }
 0x4c9   :  { %v1422_v34 = vpop.eup %1421 }
 0x4ca   :  { %364 = vrot.lane.b32.xlu0 %v1422_v34, %s1502_s7 }
 0x4cb   :  { %v1424_v35 = vpop.eup %1423 }
 0x4cc   :  { %362 = vrot.lane.b32.xlu1 %v1424_v35, %s1502_s7 }
 0x53c   :  { %v365_v36 = vpop.permute.xlu0 %364 }
 0x53d   :  { %v369_v37 = vmul.f32 %v365_v36, %v329_v15 }
 0x53e   :  { %v363_v38 = vpop.permute.xlu1 %362 }
 0x53f   :  { %v372_v39 = vrot.slane %v369_v37, 7  ;;  %v368_v40 = vmul.f32 %v363_v38, %v328_v17  ;;  %v381_v41 = vpack.c.bf16 %v369_v37, %v369_v37 }
 0x541   :  { %v380_v42 = vpack.c.bf16 %v368_v40, %v368_v40  ;;  %v1666_v43 = vsel %vm373_vm6, %v372_v39, %v368_v40  ;;  %v385_v45 = vunpack.c.l.b16 %v381_v41  ;;  %vm1222_vm6 = vcmask 130048  }
 0x543   :  { %v384_v44 = vunpack.c.l.b16 %v380_v42 }
 0x545   :  { %v386_v46 = vrot.slane %v384_v44, 1 }
 0x547   :  { %v387_v47 = vsel %vm255_vm5, %v385_v45, %v386_v46 }
 0x548   :  { %v388_v48 = vpack.c.b16 %v387_v47, %v387_v47 }
 0x54a   :  { %389 = vrot.lane.b32.xlu1 %v388_v48, %s1508_s3 }
 0x5bc   :  { %v390_v49 = vpop.permute.xlu1 %389 }
 0x5bd   :  { %1324 = vmatmul.mubr.msk.bf16.vlgmr.msra.gmra.mrb[4].mxu1 %vm60_vm1, %v390_v49 }
 0x5be   :  { %1336 = vmatpush3.bf16.msra.mxu1 %v1572_v4  ;;  %1339 = vmatprep.mubr.msk.bf16.mxu1 %vm1505_vm0, %v1504_v0 }
 0x5bf   :  { %1337 = vmatprep.subr.bf16.mxu1 %v1504_v0 }
 0x5c2   :  { %1338 = vmatpush3.bf16.msra.mxu1 %v1581_v8 }
 0x5c3   :  { %1351 = vmatprep.subr.bf16.mxu1 %v1504_v0 }
 0x690   :  { %v428_v50 = vpop.f32.mrb[4].mxu1 }
 0x691   :  { %v435_v51 = vrot.slane %v428_v50, 6  ;;  %v436_v52 = vrot.slane %v428_v50, 7  ;;  %v1325_v53 = vpop.f32.mrb[5].mxu1 }
 0x692   :  { %v431_v54 = vpop.f32.mrb[6].mxu1 }
 0x693   :  { %v439_v55 = vadd.f32 %v435_v51, %v1616_v23  ;;  %v440_v56 = vadd.f32 %v436_v52, %v1614_v20  ;;  %v1326_v57 = vpop.f32.mrb[7].mxu1 }
 0x695   :  { %v441_v59 = vmul.f32 %v439_v55, %v1620_v26  ;;  %v442_v60 = vmul.f32 %v440_v56, %v1620_v26 }
 0x697   :  { %1425 = vtanh.f32 %v441_v59 }
 0x698   :  { %1427 = vtanh.f32 %v442_v60 }
 0x6a1   :  { %v1426_v61 = vpop.eup %1425 }
 0x6a2   :  { %v1428_v62 = vpop.eup %1427  ;;  %v445_v63 = vmul.f32 %v1426_v61, %v1620_v26 }
 0x6a3   :  { %v446_v1 = vmul.f32 %v1428_v62, %v1620_v26 }
 0x6a4   :  { %v447_v2 = vadd.f32 %v445_v63, %v1628_v32 }
 0x6a5   :  { %v448_v3 = vadd.f32 %v446_v1, %v1628_v32 }
 0x6a6   :  { %459 = vrot.lane.b32.xlu0 %v447_v2, %s1502_s7  ;;  %v455_v12 = vmul.f32 %v451_v10, %v447_v2 }
 0x6a7   :  { %461 = vrot.lane.b32.xlu1 %v448_v3, %s1502_s7  ;;  %v456_v13 = vmul.f32 %v452_v11, %v448_v3 }
 0x718   :  { %v460_v5 = vpop.permute.xlu0 %459 }
 0x719   :  { %v462_v6 = vpop.permute.xlu1 %461  ;;  %v465_v7 = vmul.f32 %v460_v5, %v447_v2 }
 0x71a   :  { %v466_v9 = vmul.f32 %v462_v6, %v448_v3 }
 0x71b   :  { %469 = vrot.lane.b32.xlu0 %v465_v7, %s1508_s3 }
 0x71c   :  { %471 = vrot.lane.b32.xlu1 %v466_v9, %s1508_s3 }
 0x78d   :  { %v470_v14 = vpop.permute.xlu0 %469 }
 0x78e   :  { %v472_v15 = vpop.permute.xlu1 %471  ;;  %v475_v16 = vadd.f32 %v470_v14, %v455_v12 }
 0x78f   :  { %v476_v17 = vadd.f32 %v472_v15, %v456_v13 }
 0x790   :  { %1429 = vtanh.f32 %v475_v16  ;;  %v571_v61 = vrot.slane %v475_v16, 7 }
 0x791   :  { %1431 = vtanh.f32 %v476_v17  ;;  %v572_v62 = vrot.slane %v476_v17, 7 }
 0x79a   :  { %v1430_v18 = vpop.eup %1429 }
 0x79b   :  { %v1432_v19 = vpop.eup %1431  ;;  %481 = vrot.lane.b32.xlu0 %v1430_v18, %s1502_s7 }
 0x79c   :  { %483 = vrot.lane.b32.xlu1 %v1432_v19, %s1502_s7 }
 0x80d   :  { %v482_v21 = vpop.permute.xlu0 %481 }
 0x80e   :  { %v484_v22 = vpop.permute.xlu1 %483  ;;  %v487_v24 = vmul.f32 %v482_v21, %v447_v2 }
 0x80f   :  { %v488_v25 = vmul.f32 %v484_v22, %v448_v3 }
 0x810   :  { %v499_v27 = vpack.c.bf16 %v487_v24, %v487_v24 }
 0x811   :  { %v491_v28 = vrot.slane %v488_v25, 7  ;;  %v500_v29 = vpack.c.bf16 %v488_v25, %v488_v25 }
 0x812   :  { %v503_v30 = vunpack.c.l.b16 %v499_v27 }
 0x813   :  { %v504_v31 = vunpack.c.l.b16 %v500_v29  ;;  %v1691_v33 = vsel %vm492_vm7, %v491_v28, %v487_v24  ;;  %vm1225_vm7 = vcmask 392192  }
 0x814   :  { %v505_v34 = vrot.slane %v503_v30, 2 }
 0x815   :  { %v506_v35 = vrot.slane %v504_v31, 1 }
 0x817   :  { %v507_v36 = vsel %vm255_vm5, %v506_v35, %v505_v34 }
 0x818   :  { %v508_v37 = vpack.c.b16 %v507_v36, %v507_v36 }
 0x81a   :  { %509 = vrot.lane.b32.xlu0 %v508_v37, %s1508_s3 }
 0x88c   :  { %v510_v38 = vpop.permute.xlu0 %509 }
 0x88d   :  { %1332 = vmatmul.mubr.msk.bf16.vlgmr.msra.gmra.mrb[8].mxu0 %vm60_vm1, %v510_v38 }
 0x88e   :  { %1344 = vmatpush3.bf16.msra.mxu0 %v1572_v4  ;;  %1347 = vmatprep.mubr.msk.bf16.mxu0 %vm1505_vm0, %v1504_v0 }
 0x88f   :  { %1345 = vmatprep.subr.bf16.mxu0 %v1504_v0 }
 0x892   :  { %1346 = vmatpush3.bf16.msra.mxu0 %v1581_v8 }
 0x893   :  { %1359 = vmatprep.subr.bf16.mxu0 %v1504_v0 }
 0x960   :  { %v548_v39 = vpop.f32.mrb[8].mxu0 }
 0x961   :  { %v555_v40 = vrot.slane %v548_v39, 5  ;;  %v556_v41 = vrot.slane %v548_v39, 6  ;;  %v1333_v42 = vpop.f32.mrb[9].mxu0 }
 0x962   :  { %v551_v44 = vpop.f32.mrb[10].mxu0 }
 0x963   :  { %v559_v45 = vadd.f32 %v555_v40, %v1616_v23  ;;  %v560_v46 = vadd.f32 %v556_v41, %v1614_v20  ;;  %v1334_v47 = vpop.f32.mrb[11].mxu0 }
 0x965   :  { %v561_v48 = vmul.f32 %v559_v45, %v1620_v26  ;;  %v562_v49 = vmul.f32 %v560_v46, %v1620_v26 }
 0x967   :  { %1433 = vtanh.f32 %v561_v48 }
 0x968   :  { %1435 = vtanh.f32 %v562_v49 }
 0x971   :  { %v1434_v50 = vpop.eup %1433 }
 0x972   :  { %v1436_v51 = vpop.eup %1435  ;;  %v565_v52 = vmul.f32 %v1434_v50, %v1620_v26 }
 0x973   :  { %v566_v53 = vmul.f32 %v1436_v51, %v1620_v26 }
 0x974   :  { %v567_v54 = vadd.f32 %v565_v52, %v1628_v32 }
 0x975   :  { %v568_v55 = vadd.f32 %v566_v53, %v1628_v32 }
 0x976   :  { %579 = vrot.lane.b32.xlu1 %v567_v54, %s1502_s7  ;;  %v575_v63 = vmul.f32 %v571_v61, %v567_v54 }
 0x977   :  { %581 = vrot.lane.b32.xlu0 %v568_v55, %s1502_s7  ;;  %v576_v1 = vmul.f32 %v572_v62, %v568_v55 }
 0x9e8   :  { %v580_v56 = vpop.permute.xlu1 %579 }
 0x9e9   :  { %v582_v57 = vpop.permute.xlu0 %581  ;;  %v585_v59 = vmul.f32 %v580_v56, %v567_v54 }
 0x9ea   :  { %v586_v60 = vmul.f32 %v582_v57, %v568_v55 }
 0x9eb   :  { %589 = vrot.lane.b32.xlu1 %v585_v59, %s1508_s3 }
 0x9ec   :  { %591 = vrot.lane.b32.xlu0 %v586_v60, %s1508_s3 }
 0xa5d   :  { %v590_v2 = vpop.permute.xlu1 %589 }
 0xa5e   :  { %v592_v3 = vpop.permute.xlu0 %591  ;;  %v595_v5 = vadd.f32 %v590_v2, %v575_v63 }
 0xa5f   :  { %v596_v6 = vadd.f32 %v592_v3, %v576_v1 }
 0xa60   :  { %1437 = vtanh.f32 %v595_v5  ;;  %v691_v51 = vrot.slane %v595_v5, 7 }
 0xa61   :  { %1439 = vtanh.f32 %v596_v6  ;;  %v692_v52 = vrot.slane %v596_v6, 7 }
 0xa6a   :  { %v1438_v7 = vpop.eup %1437 }
 0xa6b   :  { %v1440_v9 = vpop.eup %1439  ;;  %601 = vrot.lane.b32.xlu1 %v1438_v7, %s1502_s7 }
 0xa6c   :  { %603 = vrot.lane.b32.xlu0 %v1440_v9, %s1502_s7 }
 0xadd   :  { %v602_v10 = vpop.permute.xlu1 %601 }
 0xade   :  { %v604_v11 = vpop.permute.xlu0 %603  ;;  %v607_v12 = vmul.f32 %v602_v10, %v567_v54 }
 0xadf   :  { %v608_v13 = vmul.f32 %v604_v11, %v568_v55 }
 0xae0   :  { %v619_v14 = vpack.c.bf16 %v607_v12, %v607_v12 }
 0xae1   :  { %v611_v15 = vrot.slane %v608_v13, 7  ;;  %v620_v16 = vpack.c.bf16 %v608_v13, %v608_v13 }
 0xae2   :  { %v623_v17 = vunpack.c.l.b16 %v619_v14 }
 0xae3   :  { %v624_v18 = vunpack.c.l.b16 %v620_v16  ;;  %v1716_v19 = vsel %vm612_vm8, %v611_v15, %v607_v12  ;;  %vm1227_vm8 = vcmask 523264  }
 0xae4   :  { %v625_v21 = vrot.slane %v623_v17, 3 }
 0xae5   :  { %v626_v22 = vrot.slane %v624_v18, 2 }
 0xae7   :  { %v627_v24 = vsel %vm255_vm5, %v626_v22, %v625_v21 }
 0xae8   :  { %v628_v25 = vpack.c.b16 %v627_v24, %v627_v24 }
 0xaea   :  { %629 = vrot.lane.b32.xlu1 %v628_v25, %s1508_s3 }
 0xb5c   :  { %v630_v27 = vpop.permute.xlu1 %629 }
 0xb5d   :  { %1340 = vmatmul.mubr.msk.bf16.vlgmr.msra.gmra.mrb[8].mxu1 %vm60_vm1, %v630_v27 }
 0xb5e   :  { %1352 = vmatpush3.bf16.msra.mxu1 %v1572_v4  ;;  %1355 = vmatprep.mubr.msk.bf16.mxu1 %vm1505_vm0, %v1504_v0 }
 0xb5f   :  { %1353 = vmatprep.subr.bf16.mxu1 %v1504_v0 }
 0xb62   :  { %1354 = vmatpush3.bf16.msra.mxu1 %v1581_v8 }
 0xc30   :  { %v668_v28 = vpop.f32.mrb[8].mxu1 }
 0xc31   :  { %v675_v29 = vrot.slane %v668_v28, 4  ;;  %v676_v30 = vrot.slane %v668_v28, 5  ;;  %v1341_v31 = vpop.f32.mrb[9].mxu1 }
 0xc32   :  { %v671_v34 = vpop.f32.mrb[10].mxu1 }
 0xc33   :  { %v679_v35 = vadd.f32 %v675_v29, %v1616_v23  ;;  %v680_v36 = vadd.f32 %v676_v30, %v1614_v20  ;;  %v1342_v37 = vpop.f32.mrb[11].mxu1 }
 0xc35   :  { %v681_v38 = vmul.f32 %v679_v35, %v1620_v26  ;;  %v682_v39 = vmul.f32 %v680_v36, %v1620_v26 }
 0xc37   :  { %1441 = vtanh.f32 %v681_v38 }
 0xc38   :  { %1443 = vtanh.f32 %v682_v39 }
 0xc41   :  { %v1442_v40 = vpop.eup %1441 }
 0xc42   :  { %v1444_v41 = vpop.eup %1443  ;;  %v685_v42 = vmul.f32 %v1442_v40, %v1620_v26 }
 0xc43   :  { %v686_v44 = vmul.f32 %v1444_v41, %v1620_v26 }
 0xc44   :  { %v687_v45 = vadd.f32 %v685_v42, %v1628_v32 }
 0xc45   :  { %v688_v46 = vadd.f32 %v686_v44, %v1628_v32 }
 0xc46   :  { %699 = vrot.lane.b32.xlu0 %v687_v45, %s1502_s7  ;;  %v695_v53 = vmul.f32 %v691_v51, %v687_v45 }
 0xc47   :  { %701 = vrot.lane.b32.xlu1 %v688_v46, %s1502_s7  ;;  %v696_v54 = vmul.f32 %v692_v52, %v688_v46 }
 0xcb8   :  { %v700_v47 = vpop.permute.xlu0 %699 }
 0xcb9   :  { %v702_v48 = vpop.permute.xlu1 %701  ;;  %v705_v49 = vmul.f32 %v700_v47, %v687_v45 }
 0xcba   :  { %v706_v50 = vmul.f32 %v702_v48, %v688_v46 }
 0xcbb   :  { %709 = vrot.lane.b32.xlu0 %v705_v49, %s1508_s3 }
 0xcbc   :  { %711 = vrot.lane.b32.xlu1 %v706_v50, %s1508_s3 }
 0xd2d   :  { %v710_v55 = vpop.permute.xlu0 %709 }
 0xd2e   :  { %v712_v56 = vpop.permute.xlu1 %711  ;;  %v715_v57 = vadd.f32 %v710_v55, %v695_v53 }
 0xd2f   :  { %v716_v59 = vadd.f32 %v712_v56, %v696_v54 }
 0xd30   :  { %1445 = vtanh.f32 %v715_v57  ;;  %v811_v39 = vrot.slane %v715_v57, 7 }
 0xd31   :  { %1447 = vtanh.f32 %v716_v59  ;;  %v812_v40 = vrot.slane %v716_v59, 7 }
 0xd3a   :  { %v1446_v60 = vpop.eup %1445 }
 0xd3b   :  { %v1448_v61 = vpop.eup %1447  ;;  %721 = vrot.lane.b32.xlu0 %v1446_v60, %s1502_s7 }
 0xd3c   :  { %723 = vrot.lane.b32.xlu1 %v1448_v61, %s1502_s7 }
 0xdad   :  { %v722_v62 = vpop.permute.xlu0 %721 }
 0xdae   :  { %v724_v63 = vpop.permute.xlu1 %723  ;;  %v727_v1 = vmul.f32 %v722_v62, %v687_v45 }
 0xdaf   :  { %v728_v2 = vmul.f32 %v724_v63, %v688_v46 }
 0xdb0   :  { %v739_v3 = vpack.c.bf16 %v727_v1, %v727_v1 }
 0xdb1   :  { %v731_v5 = vrot.slane %v728_v2, 7  ;;  %v740_v6 = vpack.c.bf16 %v728_v2, %v728_v2 }
 0xdb2   :  { %v743_v7 = vunpack.c.l.b16 %v739_v3 }
 0xdb3   :  { %v744_v9 = vunpack.c.l.b16 %v740_v6  ;;  %v1740_v10 = vsel %vm732_vm9, %v731_v5, %v727_v1  ;;  %vm1229_vm9 = vcmask 654336  }
 0xdb4   :  { %v745_v11 = vrot.slane %v743_v7, 4 }
 0xdb5   :  { %v746_v12 = vrot.slane %v744_v9, 3 }
 0xdb7   :  { %v747_v13 = vsel %vm255_vm5, %v746_v12, %v745_v11 }
 0xdb8   :  { %v748_v14 = vpack.c.b16 %v747_v13, %v747_v13 }
 0xdba   :  { %749 = vrot.lane.b32.xlu0 %v748_v14, %s1508_s3 }
 0xe2c   :  { %v750_v15 = vpop.permute.xlu0 %749 }
 0xe2d   :  { %1348 = vmatmul.mubr.msk.bf16.vlgmr.msra.gmra.mrb[12].mxu0 %vm60_vm1, %v750_v15 }
 0xe2e   :  { %1360 = vmatpush3.bf16.msra.mxu0 %v1572_v4  ;;  %1363 = vmatprep.mubr.msk.bf16.mxu0 %vm1505_vm0, %v1504_v0  ;;  %vm857_vm0 = vcmask 260101  }
 0xe2f   :  { %1361 = vmatprep.subr.bf16.mxu0 %v1504_v0 }
 0xe32   :  { %1362 = vmatpush3.bf16.msra.mxu0 %v1581_v8 }
 0xf00   :  { %v788_v16 = vpop.f32.mrb[12].mxu0 }
 0xf01   :  { %v795_v17 = vrot.slane %v788_v16, 3  ;;  %v796_v18 = vrot.slane %v788_v16, 4  ;;  %v1349_v21 = vpop.f32.mrb[13].mxu0 }
 0xf02   :  { %v791_v22 = vpop.f32.mrb[14].mxu0 }
 0xf03   :  { %v799_v24 = vadd.f32 %v795_v17, %v1616_v23  ;;  %v800_v25 = vadd.f32 %v796_v18, %v1614_v20  ;;  %v1350_v27 = vpop.f32.mrb[15].mxu0 }
 0xf05   :  { %v801_v28 = vmul.f32 %v799_v24, %v1620_v26  ;;  %v802_v4 = vmul.f32 %v800_v25, %v1620_v26 }
 0xf07   :  { %1449 = vtanh.f32 %v801_v28 }
 0xf08   :  { %1451 = vtanh.f32 %v802_v4 }
 0xf11   :  { %v1450_v29 = vpop.eup %1449 }
 0xf12   :  { %v1452_v0 = vpop.eup %1451  ;;  %v805_v8 = vmul.f32 %v1450_v29, %v1620_v26 }
 0xf13   :  { %v806_v30 = vmul.f32 %v1452_v0, %v1620_v26 }
 0xf14   :  { %v807_v31 = vadd.f32 %v805_v8, %v1628_v32 }
 0xf15   :  { %v808_v34 = vadd.f32 %v806_v30, %v1628_v32 }
 0xf16   :  { %819 = vrot.lane.b32.xlu1 %v807_v31, %s1502_s7  ;;  %v815_v41 = vmul.f32 %v811_v39, %v807_v31 }
 0xf17   :  { %821 = vrot.lane.b32.xlu0 %v808_v34, %s1502_s7  ;;  %v816_v42 = vmul.f32 %v812_v40, %v808_v34 }
 0xf88   :  { %v820_v35 = vpop.permute.xlu1 %819 }
 0xf89   :  { %v822_v36 = vpop.permute.xlu0 %821  ;;  %v825_v37 = vmul.f32 %v820_v35, %v807_v31 }
 0xf8a   :  { %v826_v38 = vmul.f32 %v822_v36, %v808_v34 }
 0xf8b   :  { %829 = vrot.lane.b32.xlu1 %v825_v37, %s1508_s3 }
 0xf8c   :  { %831 = vrot.lane.b32.xlu0 %v826_v38, %s1508_s3 }
 0xffd   :  { %v830_v44 = vpop.permute.xlu1 %829 }
 0xffe   :  { %v832_v45 = vpop.permute.xlu0 %831  ;;  %v835_v46 = vadd.f32 %v830_v44, %v815_v41 }
 0xfff   :  { %v836_v47 = vadd.f32 %v832_v45, %v816_v42 }
0x1000   :  { %1453 = vtanh.f32 %v835_v46  ;;  %v931_v29 = vrot.slane %v835_v46, 7 }
0x1001   :  { %1455 = vtanh.f32 %v836_v47  ;;  %v932_v0 = vrot.slane %v836_v47, 7 }
0x100a   :  { %v1454_v48 = vpop.eup %1453 }
0x100b   :  { %v1456_v49 = vpop.eup %1455  ;;  %841 = vrot.lane.b32.xlu1 %v1454_v48, %s1502_s7 }
0x100c   :  { %843 = vrot.lane.b32.xlu0 %v1456_v49, %s1502_s7 }
0x107d   :  { %v842_v50 = vpop.permute.xlu1 %841 }
0x107e   :  { %v844_v51 = vpop.permute.xlu0 %843  ;;  %v847_v52 = vmul.f32 %v842_v50, %v807_v31 }
0x107f   :  { %v848_v53 = vmul.f32 %v844_v51, %v808_v34 }
0x1080   :  { %v859_v54 = vpack.c.bf16 %v847_v52, %v847_v52 }
0x1081   :  { %v851_v55 = vrot.slane %v848_v53, 7  ;;  %v860_v56 = vpack.c.bf16 %v848_v53, %v848_v53 }
0x1082   :  { %v863_v57 = vunpack.c.l.b16 %v859_v54 }
0x1083   :  { %v864_v59 = vunpack.c.l.b16 %v860_v56  ;;  %v1764_v60 = vsel %vm852_vm10, %v851_v55, %v847_v52  ;;  %vm1231_vm10 = vcmask 785408  }
0x1084   :  { %v865_v61 = vrot.slane %v863_v57, 5 }
0x1085   :  { %v866_v62 = vrot.slane %v864_v59, 4 }
0x1087   :  { %v867_v63 = vsel %vm255_vm5, %v866_v62, %v865_v61 }
0x1088   :  { %v868_v1 = vpack.c.b16 %v867_v63, %v867_v63 }
0x108a   :  { %869 = vrot.lane.b32.xlu1 %v868_v1, %s1508_s3 }
0x10fc   :  { %v870_v2 = vpop.permute.xlu1 %869 }
0x10fd   :  { %1356 = vmatmul.mubr.msk.bf16.vlgmr.msra.gmra.mrb[12].mxu1 %vm60_vm1, %v870_v2 }
0x11d0   :  { %v908_v3 = vpop.f32.mrb[12].mxu1 }
0x11d1   :  { %v915_v5 = vrot.slane %v908_v3, 2  ;;  %v916_v6 = vrot.slane %v908_v3, 3  ;;  %v1357_v7 = vpop.f32.mrb[13].mxu1 }
0x11d2   :  { %v911_v9 = vpop.f32.mrb[14].mxu1 }
0x11d3   :  { %v919_v11 = vadd.f32 %v915_v5, %v1616_v23  ;;  %v920_v12 = vadd.f32 %v916_v6, %v1614_v20  ;;  %v1358_v13 = vpop.f32.mrb[15].mxu1 }
0x11d5   :  { %v921_v14 = vmul.f32 %v919_v11, %v1620_v26  ;;  %v922_v15 = vmul.f32 %v920_v12, %v1620_v26 }
0x11d7   :  { %1457 = vtanh.f32 %v921_v14 }
0x11d8   :  { %1459 = vtanh.f32 %v922_v15 }
0x11e1   :  { %v1458_v16 = vpop.eup %1457 }
0x11e2   :  { %v1460_v17 = vpop.eup %1459  ;;  %v925_v18 = vmul.f32 %v1458_v16, %v1620_v26 }
0x11e3   :  { %v926_v21 = vmul.f32 %v1460_v17, %v1620_v26 }
0x11e4   :  { %v927_v22 = vadd.f32 %v925_v18, %v1628_v32 }
0x11e5   :  { %v928_v24 = vadd.f32 %v926_v21, %v1628_v32 }
0x11e6   :  { %939 = vrot.lane.b32.xlu0 %v927_v22, %s1502_s7  ;;  %v935_v8 = vmul.f32 %v931_v29, %v927_v22 }
0x11e7   :  { %941 = vrot.lane.b32.xlu1 %v928_v24, %s1502_s7  ;;  %v936_v30 = vmul.f32 %v932_v0, %v928_v24 }
0x1258   :  { %v940_v25 = vpop.permute.xlu0 %939 }
0x1259   :  { %v942_v27 = vpop.permute.xlu1 %941  ;;  %v945_v28 = vmul.f32 %v940_v25, %v927_v22 }
0x125a   :  { %v946_v4 = vmul.f32 %v942_v27, %v928_v24 }
0x125b   :  { %949 = vrot.lane.b32.xlu0 %v945_v28, %s1508_s3 }
0x125c   :  { %951 = vrot.lane.b32.xlu1 %v946_v4, %s1508_s3 }
0x12cd   :  { %v950_v31 = vpop.permute.xlu0 %949 }
0x12ce   :  { %v952_v34 = vpop.permute.xlu1 %951  ;;  %v955_v35 = vadd.f32 %v950_v31, %v935_v8 }
0x12cf   :  { %v956_v36 = vadd.f32 %v952_v34, %v936_v30 }
0x12d0   :  { %1461 = vtanh.f32 %v955_v35  ;;  %v1051_v15 = vrot.slane %v955_v35, 7 }
0x12d1   :  { %1463 = vtanh.f32 %v956_v36  ;;  %v1052_v16 = vrot.slane %v956_v36, 7 }
0x12da   :  { %v1462_v37 = vpop.eup %1461 }
0x12db   :  { %v1464_v38 = vpop.eup %1463  ;;  %961 = vrot.lane.b32.xlu0 %v1462_v37, %s1502_s7 }
0x12dc   :  { %963 = vrot.lane.b32.xlu1 %v1464_v38, %s1502_s7 }
0x134d   :  { %v962_v39 = vpop.permute.xlu0 %961 }
0x134e   :  { %v964_v40 = vpop.permute.xlu1 %963  ;;  %v967_v41 = vmul.f32 %v962_v39, %v927_v22 }
0x134f   :  { %v968_v42 = vmul.f32 %v964_v40, %v928_v24 }
0x1350   :  { %v979_v44 = vpack.c.bf16 %v967_v41, %v967_v41 }
0x1351   :  { %v971_v45 = vrot.slane %v968_v42, 7  ;;  %v980_v46 = vpack.c.bf16 %v968_v42, %v968_v42  ;;  %v1253_v42 = vld [vmem:[%s1843_s5] ss:$0 sm:$0xff]  ;;  %s1511_s5 = smov 96  }
0x1352   :  { %v983_v47 = vunpack.c.l.b16 %v979_v44 }
0x1353   :  { %v984_v48 = vunpack.c.l.b16 %v980_v46  ;;  %v973_v49 = vsel %vm972_vm11, %v971_v45, %v967_v41  ;;  %vm1233_vm11 = vcmask 916480  }
0x1354   :  { %v985_v50 = vrot.slane %v983_v47, 6 }
0x1355   :  { %v986_v51 = vrot.slane %v984_v48, 5 }
0x1357   :  { %v987_v52 = vsel %vm255_vm5, %v986_v51, %v985_v50  ;;  %vm1100_vm5 = vcmask 253952  }
0x1358   :  { %v988_v53 = vpack.c.b16 %v987_v52, %v987_v52 }
0x135a   :  { %989 = vrot.lane.b32.xlu0 %v988_v53, %s1508_s3 }
0x13cc   :  { %v990_v54 = vpop.permute.xlu0 %989 }
0x13cd   :  { %1364 = vmatmul.mubr.msk.bf16.vlgmr.msra.gmra.mrb[16].mxu0 %vm60_vm1, %v990_v54 }
0x14a0   :  { %v1028_v55 = vpop.f32.mrb[16].mxu0 }
0x14a1   :  { %v1035_v56 = vrot.slane %v1028_v55, 1  ;;  %v1036_v57 = vrot.slane %v1028_v55, 2  ;;  %v1365_v59 = vpop.f32.mrb[17].mxu0 }
0x14a2   :  { %v1031_v61 = vpop.f32.mrb[18].mxu0 }
0x14a3   :  { %v1039_v62 = vadd.f32 %v1035_v56, %v1616_v23  ;;  %v1040_v63 = vadd.f32 %v1036_v57, %v1614_v20  ;;  %v1366_v1 = vpop.f32.mrb[19].mxu0 }
0x14a5   :  { %v1041_v2 = vmul.f32 %v1039_v62, %v1620_v26  ;;  %v1042_v3 = vmul.f32 %v1040_v63, %v1620_v26 }
0x14a7   :  { %1465 = vtanh.f32 %v1041_v2 }
0x14a8   :  { %1467 = vtanh.f32 %v1042_v3 }
0x14b1   :  { %v1466_v5 = vpop.eup %1465 }
0x14b2   :  { %v1468_v6 = vpop.eup %1467  ;;  %v1045_v7 = vmul.f32 %v1466_v5, %v1620_v26 }
0x14b3   :  { %v1046_v9 = vmul.f32 %v1468_v6, %v1620_v26 }
0x14b4   :  { %v1047_v11 = vadd.f32 %v1045_v7, %v1628_v32 }
0x14b5   :  { %v1048_v12 = vadd.f32 %v1046_v9, %v1628_v32 }
0x14b6   :  { %1059 = vrot.lane.b32.xlu0 %v1047_v11, %s1502_s7  ;;  %v1055_v17 = vmul.f32 %v1051_v15, %v1047_v11 }
0x14b7   :  { %1061 = vrot.lane.b32.xlu1 %v1048_v12, %s1502_s7  ;;  %v1056_v26 = vmul.f32 %v1052_v16, %v1048_v12 }
0x1528   :  { %v1060_v20 = vpop.permute.xlu0 %1059 }
0x1529   :  { %v1062_v23 = vpop.permute.xlu1 %1061  ;;  %v1065_v13 = vmul.f32 %v1060_v20, %v1047_v11 }
0x152a   :  { %v1066_v14 = vmul.f32 %v1062_v23, %v1048_v12 }
0x152b   :  { %1069 = vrot.lane.b32.xlu0 %v1065_v13, %s1508_s3 }
0x152c   :  { %1071 = vrot.lane.b32.xlu1 %v1066_v14, %s1508_s3 }
0x159d   :  { %v1070_v18 = vpop.permute.xlu0 %1069 }
0x159e   :  { %v1072_v21 = vpop.permute.xlu1 %1071  ;;  %v1075_v22 = vadd.f32 %v1070_v18, %v1055_v17 }
0x159f   :  { %v1076_v32 = vadd.f32 %v1072_v21, %v1056_v26 }
0x15a0   :  { %1469 = vtanh.f32 %v1075_v22 }
0x15a1   :  { %1471 = vtanh.f32 %v1076_v32 }
0x15aa   :  { %v1470_v24 = vpop.eup %1469 }
0x15ab   :  { %v1472_v25 = vpop.eup %1471  ;;  %1081 = vrot.lane.b32.xlu0 %v1470_v24, %s1502_s7 }
0x15ac   :  { %1083 = vrot.lane.b32.xlu1 %v1472_v25, %s1502_s7 }
0x15af   :  { %375 = vrot.lane.b32.xlu0 %v1666_v43, %s1508_s3  ;;  %v46_v43 = vld [vmem:[%s1842_s4] sm:$0xff] }
0x15b0   :  { %257 = vrot.lane.b32.xlu1 %v1641_v58, %s1508_s3  ;;  %v47_v58 = vld [vmem:[%s1842_s4 + $0x8] sm:$0xff] }
0x15b3   :  { %614 = vrot.lane.b32.xlu0 %v1716_v19, %s1508_s3  ;;  %v1386_v19 = vpack.c.bf16 %v47_v58, %v46_v43 }
0x15b4   :  { %494 = vrot.lane.b32.xlu1 %v1691_v33, %s1508_s3  ;;  %v48_v33 = vld [vmem:[%s1842_s4 + $0x10] sm:$0xff] }
0x15b5   :  { %1387 = vmatprep.subr.bf16.mxu1 %v1386_v19 }
0x15b6   :  { %1389 = vmatpush3.bf16.msra.mxu1 %v1386_v19 }
0x15b7   :  { %854 = vrot.lane.b32.xlu0 %v1764_v60, %s1508_s3 }
0x15b8   :  { %734 = vrot.lane.b32.xlu1 %v1740_v10, %s1508_s3  ;;  %v49_v10 = vld [vmem:[%s1842_s4 + $0x18] sm:$0xff] }
0x15b9   :  { %v1390_v60 = vpack.c.bf16 %v49_v10, %v48_v33 }
0x15bb   :  { %1391 = vmatprep.subr.bf16.mxu1 %v1390_v60 }
0x15bc   :  { %974 = vrot.lane.b32.xlu1 %v973_v49, %s1508_s3  ;;  %1393 = vmatpush3.bf16.msra.mxu1 %v1390_v60 }
0x161d   :  { %v1082_v27 = vpop.permute.xlu0 %1081 }
0x161e   :  { %v1084_v28 = vpop.permute.xlu1 %1083  ;;  %v1087_v4 = vmul.f32 %v1082_v27, %v1047_v11 }
0x161f   :  { %v1088_v29 = vmul.f32 %v1084_v28, %v1048_v12 }
0x1620   :  { %1092 = vrot.lane.b32.xlu0 %v1087_v4, %s1508_s3 }
0x1621   :  { %v1091_v0 = vrot.slane %v1088_v29, 7  ;;  %v376_v8 = vpop.permute.xlu0 %375 }
0x1622   :  { %379 = vst.msk [vmem:[#allocation2 + $0x1] sm:$0x6] %vm378_vm12, %v376_v8  ;;  %v258_v30 = vpop.permute.xlu1 %257 }
0x1623   :  { %261 = vst.msk [vmem:[#allocation2] sm:$0x3] %vm260_vm13, %v258_v30  ;;  %1094 = vrot.lane.b32.xlu1 %v1091_v0, %s1508_s3 }
0x1625   :  { %v615_v31 = vpop.permute.xlu0 %614 }
0x1626   :  { %618 = vst.msk [vmem:[#allocation2 + $0x3] sm:$0x18] %vm617_vm14, %v615_v31  ;;  %v495_v34 = vpop.permute.xlu1 %494 }
0x1627   :  { %498 = vst.msk [vmem:[#allocation2 + $0x2] sm:$0xc] %vm497_vm15, %v495_v34 }
0x1629   :  { %v855_v35 = vpop.permute.xlu0 %854 }
0x162a   :  { %858 = vst.msk [vmem:[#allocation2 + $0x5] sm:$0x60] %vm857_vm0, %v855_v35  ;;  %v735_v36 = vpop.permute.xlu1 %734 }
0x162b   :  { %738 = vst.msk [vmem:[#allocation2 + $0x4] sm:$0x30] %vm737_vm2, %v735_v36 }
0x162e   :  { %v975_v37 = vpop.permute.xlu1 %974  ;;  %v1102_v38 = vld [vmem:[#allocation2] sm:$0xff] }
0x162f   :  { %978 = vst.msk [vmem:[#allocation2 + $0x6] sm:$0xc0] %vm977_vm3, %v975_v37  ;;  %1375 = vmatprep.mubr.msk.f32.mxu1 %vm60_vm1, %v1102_v38 }
0x1692   :  { %v1093_v39 = vpop.permute.xlu0 %1092 }
0x1693   :  { %1099 = vst.msk [vmem:[#allocation2 + $0x7] sm:$0x80] %vm1098_vm4, %v1093_v39 }
0x1695   :  { %v1095_v40 = vpop.permute.xlu1 %1094 }
0x1696   :  { %1101 = vst.msk [vmem:[#allocation2 + $0xf] sm:$0x1] %vm1100_vm5, %v1095_v40 }
0x169d   :  { %v1103_v41 = vld [vmem:[#allocation2 + $0x8] sm:$0xff] }
0x169e   :  { %1376 = vmatmul.mubr.msk.f32.vlgmr.msra.gmra.mrb[16].mxu1 %vm60_vm1, %v1103_v41 }
0x1771   :  { %v1377_v44 = vpop.f32.mrb[16].mxu1 }
0x1772   :  { %v1188_v45 = vadd.f32 %v1377_v44, %v1253_v42  ;;  %v1182_v46 = vpop.f32.mrb[17].mxu1 }
0x1773   :  { %v1183_v47 = vadd.f32 %v1253_v42, %v1182_v46 }
0x1774   :  { %1473 = vtanh.f32 %v1188_v45 }
0x1775   :  { %1475 = vtanh.f32 %v1183_v47 }
0x177e   :  { %v1474_v48 = vpop.eup %1473 }
0x177f   :  { %v1476_v49 = vpop.eup %1475  ;;  %1207 = vrot.lane.b32.xlu1 %v1474_v48, %s1502_s7  ;;  %v1210_v50 = vrot.slane %v1474_v48, 2  ;;  %v1214_v53 = vrot.slane %v1474_v48, 4  ;;  %v1218_v55 = vrot.slane %v1474_v48, 6 }
0x1780   :  { %v1198_v51 = vrot.slane %v1476_v49, 4  ;;  %v1194_v52 = vrot.slane %v1476_v49, 2  ;;  %v1202_v54 = vrot.slane %v1476_v49, 6 }
0x1781   :  { %1211 = vrot.lane.b32.xlu0 %v1210_v50, %s1509_s8 }
0x1783   :  { %1199 = vrot.lane.b32.xlu1 %v1198_v51, %s1508_s3 }
0x1785   :  { %1195 = vrot.lane.b32.xlu0 %v1194_v52, %s1510_s9 }
0x1787   :  { %1215 = vrot.lane.b32.xlu1 %v1214_v53, %s1511_s5 }
0x1789   :  { %1203 = vrot.lane.b32.xlu0 %v1202_v54, %s1512_s10 }
0x178d   :  { %1219 = vrot.lane.b32.xlu0 %v1218_v55, %s1513_s11 }
0x17f1   :  { %v1208_v56 = vpop.permute.xlu1 %1207 }
0x17f3   :  { %v1212_v57 = vpop.permute.xlu0 %1211 }
0x17f5   :  { %v1200_v61 = vpop.permute.xlu1 %1199 }
0x17f7   :  { %v1196_v59 = vpop.permute.xlu0 %1195 }
0x17f8   :  { %v1223_v62 = vsel %vm1222_vm6, %v1476_v49, %v1196_v59 }
0x17f9   :  { %v1224_v63 = vsel %vm60_vm1, %v1223_v62, %v1200_v61  ;;  %v1216_v5 = vpop.permute.xlu1 %1215 }
0x17fb   :  { %v1204_v1 = vpop.permute.xlu0 %1203 }
0x17fc   :  { %v1226_v2 = vsel %vm1225_vm7, %v1224_v63, %v1204_v1 }
0x17fd   :  { %v1228_v3 = vsel %vm1227_vm8, %v1226_v2, %v1208_v56 }
0x17fe   :  { %v1230_v6 = vsel %vm1229_vm9, %v1228_v3, %v1212_v57 }
0x17ff   :  { %v1232_v7 = vsel %vm1231_vm10, %v1230_v6, %v1216_v5  ;;  %v1220_v9 = vpop.permute.xlu0 %1219 }
0x1800   :  { %v1234_v11 = vsel %vm1233_vm11, %v1232_v7, %v1220_v9 }
0x1801   :  { %1235 = vst [vmem:[%s1844_s6] sm:$0x3] %v1234_v11 }
0x1802   :  { %1240 = vsyncpa [#allocation4], 1 }

</bundles_post_ra>
